<compile_context>
chip_gen: v6e
topology: v6e:2x2x1
jax: 0.10.0
libtpu: 0.0.40
codegen_flags: <defaults>
</compile_context>

<pallas_src>
import functools

import jax
import jax.numpy as jnp
from jax.experimental import pallas as pl
from jax.experimental.pallas import tpu as pltpu

HIDDEN = 100                    # nn.Linear(num_features, 100) / BatchNorm1d(100)
H_PAD = 128                     # lane-aligned hidden width (padded lanes are exact zeros)
C_PAD = 128                     # lane-dense class width (padded lanes masked to -inf)
BN_EPS = 1e-5
COMPUTE_DTYPE = jnp.bfloat16    # MXU input dtype for the x @ W1 matmul (cast in-kernel)
SPILL_DTYPE = jnp.bfloat16      # dtype of the optional h spill (wide-feature path only)
VMEM_LIMIT = 32 * 1024 * 1024   # safe scoped-VMEM budget on v5e / v6e / v7x
MAX_BATCH_TILE = 512            # ~85% of HBM roofline per the measured tile-size table


def _round_up(x, m):
    return ((x + m - 1) // m) * m


# --------------------------- pass 1: BN statistics ---------------------------

def _partial_stats(h, tile_idx, tile_b, n_valid, part_shape):
    """Masked per-feature [sum; sumsq; 0...] for one batch tile (VPU selects only)."""
    row = tile_idx * tile_b + jax.lax.broadcasted_iota(jnp.int32, h.shape, 0)
    # jnp.where (select), NOT multiply: OOB rows of a ragged last tile hold stale VMEM
    # garbage which may be NaN/Inf; select guarantees exact zeros.
    hm = jnp.where(row < n_valid, h, 0.0)
    s = jnp.sum(hm, axis=0, keepdims=True)           # (1, H_PAD)
    sq = jnp.sum(hm * hm, axis=0, keepdims=True)     # (1, H_PAD)
    ridx = jax.lax.broadcasted_iota(jnp.int32, part_shape, 0)
    return jnp.where(ridx == 0, s, jnp.where(ridx == 1, sq, 0.0))


def _stats_only_kernel(x_ref, w1_ref, part_ref, *, tile_b, n_valid):
    """Narrow-feature path: per-tile BN partial stats only (h recomputed in pass 2)."""
    h = jnp.dot(x_ref[...].astype(COMPUTE_DTYPE), w1_ref[...],
                preferred_element_type=jnp.float32)
    part_ref[...] = _partial_stats(h, pl.program_id(0), tile_b, n_valid, part_ref.shape)


def _stats_spill_kernel(x_ref, w1_ref, h_ref, part_ref, *, tile_b, n_valid):
    """Wide-feature path: bf16 h spill to HBM + per-tile BN partial stats."""
    h = jnp.dot(x_ref[...].astype(COMPUTE_DTYPE), w1_ref[...],
                preferred_element_type=jnp.float32)
    h_ref[...] = h.astype(h_ref.dtype)
    part_ref[...] = _partial_stats(h, pl.program_id(0), tile_b, n_valid, part_ref.shape)


# ---------------- pass 2: BN + ReLU + Linear(100, n_classes) + Softmax ----------------

def _classify(hn, w2_ref, b2_ref, o_ref, n_classes):
    logits = jnp.dot(hn, w2_ref[...], preferred_element_type=jnp.float32) + b2_ref[...]
    # Padded class lanes must not contribute to the softmax denominator.
    col = jax.lax.broadcasted_iota(jnp.int32, logits.shape, 1)
    logits = jnp.where(col < n_classes, logits, -1e30)
    m = jnp.max(logits, axis=1, keepdims=True)
    e = jnp.exp(logits - m)
    denom = jnp.sum(e, axis=1, keepdims=True)
    o_ref[...] = (e * pl.reciprocal(denom, approx=True)).astype(o_ref.dtype)


def _fwd_recompute_kernel(x_ref, w1_ref, scale_ref, shift_ref, w2_ref, b2_ref, o_ref,
                          *, n_classes):
    """Recompute h = x@W1 from the streamed x tile (no h spill)."""
    h = jnp.dot(x_ref[...].astype(COMPUTE_DTYPE), w1_ref[...],
                preferred_element_type=jnp.float32)
    hn = jnp.maximum(h * scale_ref[...] + shift_ref[...], 0.0)
    _classify(hn, w2_ref, b2_ref, o_ref, n_classes)


def _fwd_spill_kernel(h_ref, scale_ref, shift_ref, w2_ref, b2_ref, o_ref, *, n_classes):
    """Read the bf16 h spill, apply folded BN + ReLU, classify."""
    h = h_ref[...].astype(jnp.float32)
    hn = jnp.maximum(h * scale_ref[...] + shift_ref[...], 0.0)
    _classify(hn, w2_ref, b2_ref, o_ref, n_classes)


# --------------------------------- wrapper ---------------------------------

def domain_classifier_forward(x, params, *, tile_b=MAX_BATCH_TILE):
    """x: (batch, num_features) f32. Returns softmax probs, squeezed like torch."""
    w1, b1, gamma, beta, w2, b2 = params
    del b1  # a constant per-feature bias cancels exactly in training-mode BatchNorm
    batch, num_features = x.shape
    n_classes = w2.shape[1]
    if n_classes > C_PAD:
        raise ValueError(f"n_classes={n_classes} exceeds lane-padded class width {C_PAD}")

    f32 = jnp.float32
    x = x.astype(f32)
    x_bytes = 4
    spill_bytes = jnp.dtype(SPILL_DTYPE).itemsize

    # Re-reading x in pass 2 beats the bf16 h round trip whenever num_features is small.
    use_recompute = num_features * x_bytes <= 2 * H_PAD * spill_bytes

    tb = _round_up(min(tile_b, _round_up(batch, 8)), 8)
    if not use_recompute:
        tb = _round_up(tb, 16)          # keep bf16 spill blocks 16-sublane aligned
    n_tiles = pl.cdiv(batch, tb)
    grid = (n_tiles,)

    # Lane-padded resident weights (one-time tiny ops, not on the streamed batch path).
    w1_p = jnp.zeros((num_features, H_PAD), f32).at[:, :HIDDEN].set(w1).astype(COMPUTE_DTYPE)
    gamma_p = jnp.zeros((1, H_PAD), f32).at[0, :HIDDEN].set(gamma)
    beta_p = jnp.zeros((1, H_PAD), f32).at[0, :HIDDEN].set(beta)
    w2_p = jnp.zeros((H_PAD, C_PAD), f32).at[:HIDDEN, :n_classes].set(w2)
    b2_p = jnp.zeros((1, C_PAD), f32).at[0, :n_classes].set(b2)

    x_spec = pl.BlockSpec((tb, num_features), lambda i: (i, 0))          # streamed
    w1_spec = pl.BlockSpec((num_features, H_PAD), lambda i: (0, 0))      # resident
    part_spec = pl.BlockSpec((None, 8, H_PAD), lambda i: (i, 0, 0))      # per-tile partials
    part_shape = jax.ShapeDtypeStruct((n_tiles, 8, H_PAD), f32)

    cparams = pltpu.CompilerParams(
        dimension_semantics=("parallel",),      # no revisited block -> both TCs on v7x
        vmem_limit_bytes=VMEM_LIMIT)

    # ---- Pass 1: per-tile BN partial statistics (+ optional bf16 h spill). ----
    if use_recompute:
        partials = pl.pallas_call(
            functools.partial(_stats_only_kernel, tile_b=tb, n_valid=batch),
            grid=grid,
            in_specs=[x_spec, w1_spec],
            out_specs=part_spec,
            out_shape=part_shape,
            compiler_params=cparams,
            cost_estimate=pl.CostEstimate(
                flops=2 * batch * num_features * H_PAD,
                transcendentals=0,
                bytes_accessed=(batch * num_features * x_bytes
                                + num_features * H_PAD * 2
                                + n_tiles * 8 * H_PAD * 4)),
        )(x, w1_p)
        h_spill = None
    else:
        h_spill, partials = pl.pallas_call(
            functools.partial(_stats_spill_kernel, tile_b=tb, n_valid=batch),
            grid=grid,
            in_specs=[x_spec, w1_spec],
            out_specs=(pl.BlockSpec((tb, H_PAD), lambda i: (i, 0)), part_spec),
            out_shape=(jax.ShapeDtypeStruct((batch, H_PAD), SPILL_DTYPE), part_shape),
            compiler_params=cparams,
            cost_estimate=pl.CostEstimate(
                flops=2 * batch * num_features * H_PAD,
                transcendentals=0,
                bytes_accessed=(batch * num_features * x_bytes
                                + num_features * H_PAD * 2
                                + batch * H_PAD * spill_bytes
                                + n_tiles * 8 * H_PAD * 4)),
        )(x, w1_p)

    # Tiny per-feature reduction of the partials + folded BN scale/shift (128-wide ops).
    stats = jnp.sum(partials, axis=0)                       # (8, H_PAD)
    mean = stats[0:1] / batch
    # TODO(synk): E[h^2]-E[h]^2 can cancel when |mean| >> std; a centered second pass
    # would be needed for badly un-standardized inputs (same caveat as torch running BN).
    var = jnp.maximum(stats[1:2] / batch - mean * mean, 0.0)   # biased batch variance
    scale = gamma_p * jax.lax.rsqrt(var + BN_EPS)            # (1, H_PAD)
    shift = beta_p - mean * scale                            # (1, H_PAD)

    vec_spec = pl.BlockSpec((1, H_PAD), lambda i: (0, 0))
    w2_spec = pl.BlockSpec((H_PAD, C_PAD), lambda i: (0, 0))
    b2_spec = pl.BlockSpec((1, C_PAD), lambda i: (0, 0))
    o_spec = pl.BlockSpec((tb, C_PAD), lambda i: (i, 0))     # lane-dense unmasked store
    o_shape = jax.ShapeDtypeStruct((batch, C_PAD), f32)

    # ---- Pass 2: BN (global stats) + ReLU + Linear(100, n_classes) + Softmax. ----
    if use_recompute:
        probs = pl.pallas_call(
            functools.partial(_fwd_recompute_kernel, n_classes=n_classes),
            grid=grid,
            in_specs=[x_spec, w1_spec, vec_spec, vec_spec, w2_spec, b2_spec],
            out_specs=o_spec,
            out_shape=o_shape,
            compiler_params=cparams,
            cost_estimate=pl.CostEstimate(
                flops=2 * batch * num_features * H_PAD + 2 * batch * H_PAD * C_PAD,
                transcendentals=batch * C_PAD + batch,
                bytes_accessed=(batch * num_features * x_bytes
                                + num_features * H_PAD * 2
                                + (H_PAD * C_PAD + 4 * H_PAD + C_PAD) * 4
                                + batch * C_PAD * 4)),
        )(x, w1_p, scale, shift, w2_p, b2_p)
    else:
        h_spec = pl.BlockSpec((tb, H_PAD), lambda i: (i, 0))
        probs = pl.pallas_call(
            functools.partial(_fwd_spill_kernel, n_classes=n_classes),
            grid=grid,
            in_specs=[h_spec, vec_spec, vec_spec, w2_spec, b2_spec],
            out_specs=o_spec,
            out_shape=o_shape,
            compiler_params=cparams,
            cost_estimate=pl.CostEstimate(
                flops=2 * batch * H_PAD * C_PAD,
                transcendentals=batch * C_PAD + batch,
                bytes_accessed=(batch * H_PAD * spill_bytes
                                + (H_PAD * C_PAD + 4 * H_PAD + C_PAD) * 4
                                + batch * C_PAD * 4)),
        )(h_spill, scale, shift, w2_p, b2_p)

    # Drop class padding, then torch `.squeeze()` removes every size-1 dimension.
    return jnp.squeeze(probs[:, :n_classes])


def init_params(key, num_features, n_classes=1):
    """Deterministic synthetic parameters (shapes match the nn.Module __init__)."""
    k1, k2, k3, k4 = jax.random.split(key, 4)
    s1 = 1.0 / jnp.sqrt(jnp.float32(num_features))
    s2 = 1.0 / jnp.sqrt(jnp.float32(HIDDEN))
    w1 = jax.random.uniform(k1, (num_features, HIDDEN), jnp.float32, -s1, s1)
    b1 = jax.random.uniform(k2, (HIDDEN,), jnp.float32, -s1, s1)
    gamma = jnp.ones((HIDDEN,), jnp.float32)    # BatchNorm1d weight init
    beta = jnp.zeros((HIDDEN,), jnp.float32)    # BatchNorm1d bias init
    w2 = jax.random.uniform(k3, (HIDDEN, n_classes), jnp.float32, -s2, s2)
    b2 = jax.random.uniform(k4, (n_classes,), jnp.float32, -s2, s2)
    return (w1, b1, gamma, beta, w2, b2)


def _reference_forward(x, params):
    """Pure-JAX reference matching the kernel's bf16 first-matmul precision."""
    w1, b1, gamma, beta, w2, b2 = params
    h = jnp.dot(x.astype(COMPUTE_DTYPE), w1.astype(COMPUTE_DTYPE),
                preferred_element_type=jnp.float32) + b1
    mean = jnp.mean(h, axis=0, keepdims=True)
    var = jnp.mean((h - mean) ** 2, axis=0, keepdims=True)
    h = (h - mean) * jax.lax.rsqrt(var + BN_EPS) * gamma + beta
    h = jnp.maximum(h, 0.0)
    logits = h @ w2 + b2
    return jnp.squeeze(jax.nn.softmax(logits, axis=1))


if __name__ == "__main__":
    key = jax.random.PRNGKey(0)
    kx_a, kp_a, kx_b, kp_b = jax.random.split(key, 4)

    # Config A: narrow features -> recompute path, ragged 2-tile grid (12 rows, tile 8).
    batch_a, nf_a, nc_a = 12, 48, 3
    x_a = jax.random.normal(kx_a, (batch_a, nf_a), jnp.float32)
    params_a = init_params(kp_a, nf_a, nc_a)
    out_a = jax.block_until_ready(domain_classifier_forward(x_a, params_a, tile_b=8))
    ref_a = _reference_forward(x_a, params_a)
    assert out_a.shape == ref_a.shape
    # bf16 first matmul + approx reciprocal in the softmax -> modest tolerance on probs.
    assert bool(jnp.allclose(out_a, ref_a, atol=5e-3, rtol=5e-3))

    # Config B: wide features -> bf16 h-spill path, ragged 2-tile grid (24 rows, tile 16).
    batch_b, nf_b, nc_b = 24, 160, 5
    x_b = jax.random.normal(kx_b, (batch_b, nf_b), jnp.float32)
    params_b = init_params(kp_b, nf_b, nc_b)
    out_b = jax.block_until_ready(domain_classifier_forward(x_b, params_b, tile_b=16))
    ref_b = _reference_forward(x_b, params_b)
    assert out_b.shape == ref_b.shape
    # bf16 h spill adds ~2^-9 relative rounding on the pre-BN activations.
    assert bool(jnp.allclose(out_b, ref_b, atol=1e-2, rtol=1e-2))

    # TODO(synk): GradientReversalLayer only affects the backward pass; forward is identity.
    print("KERNEL_OK")
</pallas_src>

<mosaic_0001>
module attributes {stable_mosaic.version = 11 : i64} {
  func.func @_stats_only_kernel(%arg0: i32, %arg1: memref<8x48xf32, #tpu.memory_space<vmem>>, %arg2: memref<48x128xbf16, #tpu.memory_space<vmem>>, %arg3: memref<1x8x128xf32, #tpu.memory_space<vmem>>) attributes {dimension_semantics = [#tpu.dimension_semantics<parallel>], iteration_bounds = array<i64: 2>, scalar_prefetch = 0 : i64, scratch_operands = 0 : i64, tpu.core_type = #tpu.core_type<tc>, window_params = [{transform_indices = @transform_0, window_bounds = array<i64: 8, 48>}, {pipeline_mode = #tpu.pipeline_mode<synchronous>, transform_indices = @transform_1, window_bounds = array<i64: 48, 128>}, {transform_indices = @transform_2, window_bounds = array<i64: 1, 8, 128>}]} {
    %c0 = arith.constant 0 : index
    %c0_0 = arith.constant 0 : index
    %0 = vector.load %arg1[%c0, %c0_0] : memref<8x48xf32, #tpu.memory_space<vmem>>, vector<8x48xf32>
    %1 = arith.truncf %0 : vector<8x48xf32> to vector<8x48xbf16>
    %c0_1 = arith.constant 0 : index
    %c0_2 = arith.constant 0 : index
    %2 = vector.load %arg2[%c0_1, %c0_2] : memref<48x128xbf16, #tpu.memory_space<vmem>>, vector<48x128xbf16>
    %cst = arith.constant dense<0.000000e+00> : vector<8x128xf32>
    %3 = tpu.matmul %1, %2, %cst {dimension_numbers = #tpu.dot_dimension_numbers<[1], [0], [0], [1], [0, 0, 1, 1], [], []>} : vector<8x48xbf16>, vector<48x128xbf16>, vector<8x128xf32> -> vector<8x128xf32>
    %c8_i32 = arith.constant 8 : i32
    %4 = arith.muli %arg0, %c8_i32 : i32
    %5 = tpu.iota {dimensions = array<i32: 0>} : vector<8x128xi32>
    %6 = vector.broadcast %4 : i32 to vector<8x128xi32>
    %7 = arith.addi %6, %5 : vector<8x128xi32>
    %c12_i32 = arith.constant 12 : i32
    %8 = vector.broadcast %c12_i32 : i32 to vector<8x128xi32>
    %9 = arith.cmpi slt, %7, %8 : vector<8x128xi32>
    %cst_3 = arith.constant 0.000000e+00 : f32
    %10 = vector.broadcast %cst_3 : f32 to vector<8x128xf32>
    %11 = arith.select %9, %3, %10 : vector<8x128xi1>, vector<8x128xf32>
    %cst_4 = arith.constant dense<0.000000e+00> : vector<128xf32>
    %12 = vector.multi_reduction <add>, %11, %cst_4 [0] : vector<8x128xf32> to vector<128xf32>
    %13 = vector.shape_cast %12 : vector<128xf32> to vector<1x128xf32>
    %14 = arith.mulf %11, %11 : vector<8x128xf32>
    %cst_5 = arith.constant dense<0.000000e+00> : vector<128xf32>
    %15 = vector.multi_reduction <add>, %14, %cst_5 [0] : vector<8x128xf32> to vector<128xf32>
    %16 = vector.shape_cast %15 : vector<128xf32> to vector<1x128xf32>
    %17 = tpu.iota {dimensions = array<i32: 0>} : vector<8x128xi32>
    %c0_i32 = arith.constant 0 : i32
    %18 = vector.broadcast %c0_i32 : i32 to vector<8x128xi32>
    %19 = arith.cmpi eq, %17, %18 : vector<8x128xi32>
    %c1_i32 = arith.constant 1 : i32
    %20 = vector.broadcast %c1_i32 : i32 to vector<8x128xi32>
    %21 = arith.cmpi eq, %17, %20 : vector<8x128xi32>
    %cst_6 = arith.constant 0.000000e+00 : f32
    %22 = vector.shape_cast %16 : vector<1x128xf32> to vector<1x128xf32>
    %23 = vector.broadcast %22 : vector<1x128xf32> to vector<8x128xf32>
    %24 = vector.broadcast %cst_6 : f32 to vector<8x128xf32>
    %25 = arith.select %21, %23, %24 : vector<8x128xi1>, vector<8x128xf32>
    %26 = vector.shape_cast %13 : vector<1x128xf32> to vector<1x128xf32>
    %27 = vector.broadcast %26 : vector<1x128xf32> to vector<8x128xf32>
    %28 = arith.select %19, %27, %25 : vector<8x128xi1>, vector<8x128xf32>
    %c0_7 = arith.constant 0 : index
    %c0_8 = arith.constant 0 : index
    %c0_9 = arith.constant 0 : index
    %29 = vector.load %arg3[%c0_7, %c0_8, %c0_9] : memref<1x8x128xf32, #tpu.memory_space<vmem>>, vector<1x8x128xf32>
    %30 = vector.shape_cast %29 : vector<1x8x128xf32> to vector<8x128xf32>
    %31 = vector.shape_cast %28 : vector<8x128xf32> to vector<1x8x128xf32>
    tpu.vector_store %arg3[%c0_7, %c0_8, %c0_9], %31 {strides = array<i32>} : memref<1x8x128xf32, #tpu.memory_space<vmem>>, vector<1x8x128xf32>,
    return
  }
  func.func @transform_0(%arg0: i32) -> (i32, i32) {
    %c0_i32 = arith.constant 0 : i32
    %c0_i32_0 = arith.constant 0 : i32
    return %arg0, %c0_i32 : i32, i32
  }
  func.func @transform_1(%arg0: i32) -> (i32, i32) {
    %c0_i32 = arith.constant 0 : i32
    %c0_i32_0 = arith.constant 0 : i32
    %c0_i32_1 = arith.constant 0 : i32
    return %c0_i32, %c0_i32_0 : i32, i32
  }
  func.func @transform_2(%arg0: i32) -> (i32, i32, i32) {
    %c0_i32 = arith.constant 0 : i32
    %c0_i32_0 = arith.constant 0 : i32
    %c0_i32_1 = arith.constant 0 : i32
    return %arg0, %c0_i32, %c0_i32_0 : i32, i32, i32
  }
}

</mosaic_0001>

<bundles_post_ra>
// kernel: tpu_custom_call.1
= control target key start
LH: loop header
LB: loop body
LE: loop exit
PB: predicated region body
PF: predicated region fallthrough
CT: control target
= control target key end

     0   :  { %7 = vsyncpa [#allocation3], 0  ;;  %s772_s0 = inlined_call_operand.hbm [shape: f32[12,48], index: 0, kind: input, shape index: {}]   ;;  %s773_s1 = inlined_call_operand.hbm [shape: bf16[48,128], index: 1, kind: input, shape index: {}]   ;;  %s774_s2 = inlined_call_operand.hbm [shape: f32[2,8,128], index: 2, kind: output, shape index: {}]  }
   0x1   :  { %9 = vsyncpa [#allocation3 + $0x1], 0 }
   0x2   :  { %10 = vsyncpa [#allocation6], 0 }
   0x3   :  { %11 = vsyncpa [#allocation4], 0 }
   0x4   :  { %13 = vsyncpa [#allocation4 + $0x1], 0  ;;  %s607_s9 = smov 0   ;;  %s609_s10 = smov 0  }
   0x5   :  { %s611_s11 = smov 0   ;;  %s613_s12 = smov 0  }
   0x6 LB: > { %s628_s13 = sadd.s32 4294967295, %s583_s12   ;;  %s364_s14 = sadd.s32 4294967294, %s583_s12   ;;  %s583_s12 = sphi %s613_s12, %s796_s12   ;;  %s579_s11 = sphi %s611_s11, %s795_s11   ;;  %s575_s10 = sphi %s609_s10, %s794_s10   ;;  %s571_s9 = sphi %s607_s9, %s793_s9  }
   0x7   : > { %p39_p0 = scmp.ne.s32.totalorder %s575_s10, %s571_s9  ;;  %p775_p1 = scmp.eq.s32.totalorder %s628_s13, 0 }
   0x8   : > { %p90_p3 = scmp.eq.s32.totalorder %s364_s14, 1  ;;  %p365_p5 = scmp.ge.s32.totalorder %s583_s12, 1 }
   0x9   : > { %p637_p4 = por %p775_p1, %p39_p0  ;;  %p97_p7 = scmp.lt.s32.totalorder %s583_s12, 3 }
   0xa   : > { %p642_p6 = por %p90_p3, %p39_p0  ;;  %s585_s18 = smov [#allocation5]  }
   0xb   : > { %s779_s15 = scalar_select %p637_p4, 1, 0 }
   0xc   : > { %s780_s16 = scalar_select %p642_p6, 1, 0 }
   0xd   : > { %p647_p8 = pnand %p365_p5, %p97_p7  ;;  %s109_s19 = sshll.u32 %s585_s18, 4  ;;  %s110_s19 = int_to_ptr.vmem [resolvable:$true] %s109_s19 }
   0xe   : > { %s661_s21 = sadd.s32 1, %s583_s12   ;;  %s26_s22 = sadd.s32 1, %s579_s11 }
   0xf   : > { %s781_s17 = scalar_select %p647_p8, 1, 0 }
  0x10   : > { %p405_p9 = pneg %p647_p8  ;;  %s23_s23 = ssub.s32 %s583_s12, %s661_s21 }
  0x11   : > { %s472_s24 = scalar_lea.vmem %s110_s19, 384  ;;  %p480_p5 = scmp.lt.s32.totalorder %s110_s19, %s110_s19 }
  0x12   : > { %p656_p11 = pnand %p405_p9, %p775_p1  ;;  %p473_p13 = scmp.ne.s32.totalorder %s110_s19, %s472_s24 }
  0x13   : > { %p481_p7 = scmp.lt.s32.totalorder %s472_s24, %s472_s24 }
  0x14   : > { %p463_p12 = pneg %p656_p11 }
  0x15   : > { %p482_p10 = por %p481_p7, %p480_p5 }
  0x16   : > { %p475_p0 = pnand %p473_p13, %p463_p12 }
  0x18   : > { %p476_p3 = pneg %p475_p0 }
  0x1a   : > { %p483_p2 = pnand %p482_p10, %p476_p3 }
  0x1c   : > { %486 = shalt.err (!%p483_p2)
}
  0x1d   : > { %s586_s25 = smov 64   ;;  %s587_s26 = smov 4  }
  0x1e   : > { %408 = dma.hbm_to_vmem [thread:$0]  (!%p656_p11), %s773_s1, 384, %s110_s19, [#allocation6], %s586_s25, %s586_s25, %s587_s26  }
  0x1f   : > { %p24_p9 = scmp.eq.s32.totalorder %s23_s23, 0  ;;  %p33_p12 = scmp.ne.s32.totalorder %s579_s11, %s575_s10 }
  0x20   : > { %p34_p10 = scmp.eq.s32.totalorder %s583_s12, 0  ;;  %p418_p2 = scmp.lt.s32.totalorder %s583_s12, 2 }
  0x21   : > { %s678_s29 = scalar_select %p24_p9, %s579_s11, %s26_s22  }
  0x22   : > { %p35_p13 = por %p34_p10, %p33_p12  ;;  %p783_p0 = scmp.eq.s32.totalorder %s628_s13, 1 }
  0x23   : > { %s123_s3 = sand.u32 1, %s579_s11   ;;  %s369_s4 = sshll.u32 %s583_s12, 7 }
  0x24   : > { %p682_p3 = por %p783_p0, %p33_p12  ;;  %s368_s5 = sshll.u32 %s123_s3, 3 }
  0x25   : > { %s691_s8 = scalar_lea.hbm %s772_s0, %s369_s4  ;;  %s127_s14 = scalar_lea.vmem [#allocation2], %s368_s5 }
  0x26   : > { %s784_s30 = scalar_select %p682_p3, 1, 0 }
  0x27   : > { %s134_s18 = sshll.u32 %s127_s14, 4  ;;  %p693_p11 = pnand %p418_p2, %p35_p13  ;;  %s135_s18 = int_to_ptr.vmem [resolvable:$true] %s134_s18 }
  0x28   : > { %s124_s20 = scalar_lea.sflag [#allocation3], %s123_s3  ;;  %s487_s22 = scalar_lea.hbm %s691_s8, 128 }
  0x29   : > { %p488_p5 = scmp.ne.s32.totalorder %s691_s8, %s487_s22  ;;  %p489_p7 = pneg %p693_p11 }
  0x2a   : > { %s492_s25 = scalar_lea.hbm %s772_s0, 256  ;;  %p493_p10 = scmp.lt.s32.totalorder %s691_s8, %s772_s0 }
  0x2b   : > { %p490_p9 = pnand %p489_p7, %p488_p5  ;;  %p494_p2 = scmp.lt.s32.totalorder %s492_s25, %s487_s22 }
  0x2d   : > { %p491_p12 = pneg %p490_p9  ;;  %p495_p13 = por %p494_p2, %p493_p10 }
  0x2f   : > { %p496_p0 = pnand %p495_p13, %p491_p12 }
  0x31   : > { %499 = shalt.err (!%p496_p0)
}
  0x32   : > { %s500_s28 = scalar_lea.vmem %s135_s18, 128  ;;  %s588_s3 = smov [#allocation2]  }
  0x33   : > { %p501_p1 = scmp.ne.s32.totalorder %s135_s18, %s500_s28  ;;  %s505_s4 = sshll.u32 %s588_s3, 4  ;;  %s506_s4 = int_to_ptr.vmem [resolvable:$false] %s505_s4 }
  0x34   : > { %s507_s5 = scalar_lea.vmem %s506_s4, 256  ;;  %p508_p5 = scmp.lt.s32.totalorder %s135_s18, %s506_s4 }
  0x35   : > { %p503_p6 = pnand %p501_p1, %p489_p7  ;;  %p509_p9 = scmp.lt.s32.totalorder %s507_s5, %s500_s28 }
  0x37   : > { %p504_p3 = pneg %p503_p6  ;;  %p510_p4 = por %p509_p9, %p508_p5 }
  0x39   : > { %p511_p8 = pnand %p510_p4, %p504_p3 }
  0x3b   : > { %514 = shalt.err (!%p511_p8)
}
  0x3c   : > { %412 = dma.hbm_to_vmem [thread:$0]  (!%p693_p11), %s691_s8, 128, %s135_s18, %s124_s20  }
  0x3d   : > { %p786_p12 = scmp.ne.s32.totalorder %s781_s17, 0 }
  0x3e   : > { %s714_s6 = sand.u32 (!%p786_p12), 1, %s575_s10   ;;  %p787_p1 = scmp.ne.s32.totalorder (!%p786_p12), %s779_s15, 0 }
  0x3f   : > { %143 = sbr.rel (%p786_p12) target bundleno = 308 (0x134), region = 28  ;;  %s371_s7 = sshll.u32 (!%p786_p12), %s714_s6, 3 }
  0x40   : > { %s146_s14 = scalar_lea.sflag (!%p786_p12), [#allocation3], %s714_s6  ;;  %s149_s22 = scalar_lea.vmem (!%p786_p12), [#allocation2], %s371_s7 }
  0x44   : > { %558 = dma.done.wait (%p787_p1), %s146_s14, 128  }
  0x45   : > { %560 = vsyncadd (%p787_p1), %s146_s14, 4294967168  ;;  %p788_p4 = scmp.eq.s32.totalorder %s628_s13, 0 }
  0x47   : > { %562 = dma.done.wait (%p788_p4), [#allocation6], 384   ;;  %p789_p6 = pmov %p788_p4 }
  0x48   : > { %v589_v0 = vmov 0.0   ;;  %vm590_vm0 = vmmov 0   ;;  %v458_v1 = vld [vmem:[#allocation5 + $0x10] sm:$0xff]   ;;  %v459_v2 = vld [vmem:[#allocation5 + $0x8] sm:$0xff]   ;;  %v460_v3 = vld [vmem:[#allocation5] sm:$0xff]   ;;  %vm201_vm1 = vcmask 392192   ;;  %v246_v6 = vlaneseq }
  0x49   : > { %564 = vsyncadd (%p789_p6), [#allocation6], 4294966912  ;;  %387 = vmatprep.subr.bf16.mxu0 %v589_v0  ;;  %393 = vmatprep.mubr.msk.bf16.mxu0 %vm590_vm0, %v589_v0  ;;  %v175_v4 = vld [vmem:[%s149_s22] sm:$0xff]  ;;  %s378_s15 = sshll.u32 %s628_s13, 3  ;;  %s380_s17 = sshll.u32 %s628_s13, 7 }
  0x4a   : > { %388 = vmatpush3.bf16.msra.mxu0 %v458_v1  ;;  %v176_v5 = vpack.c.bf16 %v175_v4, %v175_v4  ;;  %v247_v7 = vshrl.u32 %v246_v6, 7  ;;  %v248_v8 = vstv %s378_s15  ;;  %s173_s8 = scalar_lea.vmem [#allocation7], %s371_s7  ;;  %s735_s23 = scalar_lea.hbm %s774_s2, %s380_s17 }
  0x4b   : > { %389 = vmatprep.subr.bf16.mxu0 %v589_v0  ;;  %s284_s18 = sshll.u32 %s173_s8, 4  ;;  %s271_s24 = scalar_lea.sflag [#allocation4], %s714_s6  ;;  %s285_s18 = int_to_ptr.vmem [resolvable:$true] %s284_s18 }
  0x4c   : > { %v249_v9 = vadd.s32 %v248_v8, %v247_v7  ;;  %vm266_vm3 = vcmp.eq.s32.totalorder %v247_v7, 1  ;;  %vm265_vm4 = vcmp.eq.s32.totalorder %v247_v7, 0  ;;  %s515_s25 = scalar_lea.vmem %s285_s18, 128  ;;  %p790_p3 = scmp.ne.s32.totalorder %s784_s30, 0 }
  0x4d   : > { %p516_p8 = scmp.ne.s32.totalorder %s285_s18, %s515_s25  ;;  %s591_s13 = smov [#allocation7]  }
  0x4e   : > { %390 = vmatpush3.bf16.msra.mxu0 %v459_v2  ;;  %vm250_vm2 = vcmp.lt.s32.totalorder %v249_v9, 12  ;;  %s519_s26 = sshll.u32 %s591_s13, 4  ;;  %s520_s26 = int_to_ptr.vmem [resolvable:$false] %s519_s26 }
  0x4f   : > { %391 = vmatprep.subr.bf16.mxu0 %v589_v0  ;;  %p517_p11 = pnand %p516_p8, %p790_p3  ;;  %s521_s27 = scalar_lea.vmem %s520_s26, 256 }
  0x50   : > { %p522_p10 = scmp.lt.s32.totalorder %s285_s18, %s520_s26  ;;  %p523_p2 = scmp.lt.s32.totalorder %s521_s27, %s515_s25 }
  0x51   : > { %p518_p7 = pneg %p517_p11 }
  0x52   : > { %392 = vmatpush3.bf16.msra.mxu0 %v460_v3  ;;  %p524_p13 = por %p523_p2, %p522_p10 }
  0x54   : > { %p525_p0 = pnand %p524_p13, %p518_p7 }
  0x55   : > { %394 = vmatmul.mubr.msk.bf16.vlgmr.msra.gmra.mxu0 %vm201_vm1, %v176_v5 }
 0x115   : > { %v239_v10 = vpop.f32.mrf.mxu0 }
 0x116   : > { %v251_v11 = vsel %vm250_vm2, %v239_v10, 0.0 }
 0x117   : > { %v252_v12 = vrot.slane %v251_v11, 4  ;;  %v258_v13 = vmul.f32 %v251_v11, %v251_v11  ;;  %v395_v14 = vpop.f32.mrf.mxu0 }
 0x119   : > { %v253_v15 = vadd.f32 %v252_v12, %v251_v11  ;;  %v259_v16 = vrot.slane %v258_v13, 4  ;;  %v242_v17 = vpop.f32.mrf.mxu0 }
 0x11b   : > { %v254_v18 = vrot.slane %v253_v15, 2  ;;  %v260_v19 = vadd.f32 %v259_v16, %v258_v13  ;;  %v396_v20 = vpop.f32.mrf.mxu0 }
 0x11d   : > { %v255_v21 = vadd.f32 %v254_v18, %v253_v15  ;;  %v261_v22 = vrot.slane %v260_v19, 2 }
 0x11f   : > { %v262_v23 = vadd.f32 %v261_v22, %v260_v19  ;;  %v256_v24 = vrot.slane %v255_v21, 1 }
 0x121   : > { %v263_v25 = vrot.slane %v262_v23, 1  ;;  %v257_v27 = vadd.f32 %v256_v24, %v255_v21 }
 0x123   : > { %v264_v26 = vadd.f32 %v263_v25, %v262_v23 }
 0x125   : > { %v267_v28 = vsel %vm266_vm3, %v264_v26, 0.0 }
 0x126   : > { %v268_v29 = vsel %vm265_vm4, %v257_v27, %v267_v28 }
 0x127   : > { %269 = vst [vmem:[%s173_s8] sm:$0xff] %v268_v29 }
 0x128   : > { %528 = shalt.err (!%p525_p0)
}
 0x129   : > { %s529_s28 = scalar_lea.hbm %s735_s23, 128  ;;  %s533_s5 = scalar_lea.hbm %s774_s2, 256 }
 0x12a   : > { %p530_p5 = scmp.ne.s32.totalorder %s735_s23, %s529_s28  ;;  %p534_p1 = scmp.lt.s32.totalorder %s735_s23, %s774_s2 }
 0x12b   : > { %p535_p4 = scmp.lt.s32.totalorder %s533_s5, %s529_s28 }
 0x12c   : > { %p531_p9 = pnand %p530_p5, %p790_p3 }
 0x12d   : > { %p536_p6 = por %p535_p4, %p534_p1 }
 0x12e   : > { %p532_p12 = pneg %p531_p9 }
 0x130   : > { %p537_p8 = pnand %p536_p6, %p532_p12 }
 0x132   : > { %540 = shalt.err (!%p537_p8)
}
 0x133   : > { %403 = dma.vmem_to_hbm [thread:$0]  (%p790_p3), %s285_s18, 128, %s735_s23, %s271_s24  }
 0x134 PF: > { %s296_s14 = sand.u32 1, %s571_s9   ;;  %p791_p11 = scmp.ne.s32.totalorder %s780_s16, 0 }
 0x135   : > { %p792_p7 = scmp.ge.s32.totalorder %s583_s12, 2  ;;  %s297_s22 = scalar_lea.sflag [#allocation4], %s296_s14 }
 0x137   : > { %p414_p10 = pnand %p792_p7, %p791_p11 }
 0x139   : > { %p415_p2 = pneg %p414_p10 }
 0x13b   : > { %566 = dma.done.wait (%p415_p2), %s297_s22, 128  }
 0x13c   : > { %568 = vsyncadd (%p415_p2), %s297_s22, 4294967168  ;;  %p16_p13 = scmp.ge.s32.totalorder %s661_s21, 4   ;;  %s793_s9 = smov %s575_s10 }
 0x13d   : > { %s794_s10 = smov %s579_s11  ;;  %s795_s11 = smov %s678_s29 }
 0x13e   : > { %s796_s12 = smov %s661_s21  ;;  %18 = sbr.rel (!%p16_p13) target bundleno = 6 (0x6), region = 77 }
 0x143   :  { %302 = vsyncpa [#allocation3], 1 }
 0x144   :  { %304 = vsyncpa [#allocation3 + $0x1], 1 }
 0x145   :  { %305 = vsyncpa [#allocation6], 1 }
 0x146   :  { %306 = vsyncpa [#allocation4], 1 }
 0x147   :  { %308 = vsyncpa [#allocation4 + $0x1], 1 }

</bundles_post_ra>
